<compile_context>
chip_gen: v5e
topology: v5e:2x2
jax: 0.10.0
libtpu: 0.0.40
codegen_flags: <defaults>
</compile_context>

<pallas_src>
import jax
import jax.numpy as jnp
from jax import lax
from jax.experimental import pallas as pl
from jax.experimental.pallas import tpu as pltpu

FEAT_IN = 3      # real input features
FEAT_PAD = 8     # input features padded to 8 lanes
OUT_REAL = 2     # real output features
OUT_PAD = 8      # output padded to 8 lanes (full-last-dim block -> masked vst)
HID = 128        # hidden width (all middle layers padded to 128x128)
NUM_MID = 8      # fc2..fc9


def _round_up(n, m):
    return (n + m - 1) // m * m


def mlp_kernel(x_ref, w0_ref, b0_ref, wm_ref, bm_ref, wl_ref, bl_ref, o_ref):
    """Full 10-layer MLP forward for one batch tile, entirely in VMEM.

    x_ref : (tb, 8)          f32   input (features zero-padded to 8 lanes)
    w0_ref: (8, 128)         f32   fc1 weight (zero-padded from (3, 64))
    b0_ref: (1, 128)         f32   fc1 bias
    wm_ref: (8, 128, 128)    bf16  fc2..fc9 weight stack (zero-padded)
    bm_ref: (8, 1, 128)      f32   fc2..fc9 bias stack
    wl_ref: (128, 8)         f32   fc10 weight (zero-padded from (64, 2))
    bl_ref: (1, 8)           f32   fc10 bias
    o_ref : (tb, 8)          f32   output (only lanes [0:2] are real)
    """
    # fc1: (tb, 8) @ (8, 128) on the MXU, bf16 operands / f32 accumulate.
    y = jnp.dot(x_ref[...].astype(jnp.bfloat16),
                w0_ref[...].astype(jnp.bfloat16),
                preferred_element_type=jnp.float32)
    h = jnp.maximum(y + b0_ref[...], 0.0).astype(jnp.bfloat16)

    # fc2..fc9: 8 x (128 -> 128) + ReLU, fully unrolled over the bf16 stack.
    def mid(i, h):
        y = jnp.dot(h, wm_ref[i], preferred_element_type=jnp.float32)
        return jnp.maximum(y + bm_ref[i], 0.0).astype(jnp.bfloat16)

    h = lax.fori_loop(0, NUM_MID, mid, h, unroll=True)

    # Dropout(p=0.25): identity in eval mode.
    # fc10: (tb, 128) @ (128, 8) + bias, no ReLU; store is already (tb, 8).
    y = jnp.dot(h, wl_ref[...].astype(jnp.bfloat16),
                preferred_element_type=jnp.float32)
    o_ref[...] = (y + bl_ref[...]).astype(o_ref.dtype)


def pack_params(params):
    """Pack list of 10 (W_t (in,out) f32, b (out,) f32) into padded arrays.

    Zero padding is exact: padded input lanes are 0, padded output lanes get
    0 weight + 0 bias and stay 0 through every ReLU.
    """
    assert len(params) == 10

    w1, b1 = params[0]
    w0 = jnp.zeros((FEAT_PAD, HID), jnp.float32).at[:w1.shape[0], :w1.shape[1]].set(w1)
    b0 = jnp.zeros((1, HID), jnp.float32).at[0, :b1.shape[0]].set(b1)

    wm = jnp.zeros((NUM_MID, HID, HID), jnp.float32)
    bm = jnp.zeros((NUM_MID, 1, HID), jnp.float32)
    for i, (w, b) in enumerate(params[1:9]):
        fin, fout = w.shape
        wm = wm.at[i, :fin, :fout].set(w)
        bm = bm.at[i, 0, :fout].set(b)

    wL, bL = params[9]
    wl = jnp.zeros((HID, OUT_PAD), jnp.float32).at[:wL.shape[0], :wL.shape[1]].set(wL)
    bl = jnp.zeros((1, OUT_PAD), jnp.float32).at[0, :bL.shape[0]].set(bL)

    # bf16 middle-layer weights: halves HBM bytes, feeds the MXU its fast dtype.
    return w0, b0, wm.astype(jnp.bfloat16), bm, wl, bl


def net_forward(x, packed, *, batch_tile=1024):
    """x: (B, 3) float32.  Returns (B, 2) float32."""
    w0, b0, wm, bm, wl, bl = packed
    B, f_in = x.shape
    assert f_in <= FEAT_PAD

    batch_tile = max(8, _round_up(batch_tile, 8))
    base = _round_up(B, 8)
    # Pick tb so the grid has >=2 steps whenever B > 8 (so v7x's two
    # TensorCores both get work via "parallel"), capped at batch_tile (1024)
    # to amortize the ~0.35 us per-grid-step overhead at large B.
    tb = min(batch_tile, _round_up(-(-base // 2), 8))
    Bp = _round_up(B, tb)

    # Tiny pad pass: (Bp, 8) f32 (32 B/row), not (Bp, 128) f32.
    xp = jnp.zeros((Bp, FEAT_PAD), jnp.float32).at[:B, :f_in].set(x)

    const2 = lambda i: (0, 0)
    const3 = lambda i: (0, 0, 0)

    out = pl.pallas_call(
        mlp_kernel,
        out_shape=jax.ShapeDtypeStruct((Bp, OUT_PAD), jnp.float32),
        grid=(Bp // tb,),
        in_specs=[
            pl.BlockSpec((tb, FEAT_PAD), lambda i: (i, 0)),      # x: batch-tiled
            pl.BlockSpec((FEAT_PAD, HID), const2),               # fc1 W (resident)
            pl.BlockSpec((1, HID), const2),                      # fc1 b
            pl.BlockSpec((NUM_MID, HID, HID), const3),           # fc2..9 W stack
            pl.BlockSpec((NUM_MID, 1, HID), const3),             # fc2..9 b stack
            pl.BlockSpec((HID, OUT_PAD), const2),                # fc10 W
            pl.BlockSpec((1, OUT_PAD), const2),                  # fc10 b
        ],
        out_specs=pl.BlockSpec((tb, OUT_PAD), lambda i: (i, 0)),
        compiler_params=pltpu.CompilerParams(
            dimension_semantics=("parallel",),   # megacore sharding on v7x
            vmem_limit_bytes=32 << 20,           # safe on v7x's 64 MiB physical VMEM
        ),
    )(xp, w0, b0, wm, bm, wl, bl)

    # Slice the real (B, 2) result outside the kernel.
    return out[:B, :OUT_REAL]


def init_params(key):
    """Deterministic parameter init matching the PyTorch layer shapes.

    PyTorch nn.Linear(in, out) holds weight (out, in); we store the transpose
    (in, out) so the kernel does x @ W directly.
    """
    dims = [(3, 64), (64, 128), (128, 128), (128, 128), (128, 128),
            (128, 128), (128, 128), (128, 128), (128, 64), (64, 2)]
    params = []
    for i, (fin, fout) in enumerate(dims):
        kw, kb = jax.random.split(jax.random.fold_in(key, i))
        bound = 1.0 / jnp.sqrt(fin)
        w_t = jax.random.uniform(kw, (fin, fout), jnp.float32, -bound, bound)
        b = jax.random.uniform(kb, (fout,), jnp.float32, -bound, bound)
        params.append((w_t, b))
    return params


if __name__ == "__main__":
    key = jax.random.PRNGKey(0)
    k_x, k_p = jax.random.split(key)

    B = 16
    x = jax.random.normal(k_x, (B, FEAT_IN), dtype=jnp.float32)
    params = init_params(k_p)
    packed = pack_params(params)

    out = net_forward(x, packed)
    jax.block_until_ready(out)

    # Pure-JAX reference with the same bf16-operand / f32-accumulate math.
    h = x
    for i, (w, b) in enumerate(params):
        y = jnp.dot(h.astype(jnp.bfloat16), w.astype(jnp.bfloat16),
                    preferred_element_type=jnp.float32) + b
        h = jnp.maximum(y, 0.0) if i < len(params) - 1 else y

    assert out.shape == (B, OUT_REAL)
    assert jnp.allclose(out, h, atol=1e-3, rtol=1e-3), (
        f"max abs err {jnp.max(jnp.abs(out - h))}")

    print("KERNEL_OK")
</pallas_src>

<mosaic_0001>
module attributes {stable_mosaic.version = 11 : i64} {
  func.func @mlp_kernel(%arg0: i32, %arg1: memref<8x8xf32, #tpu.memory_space<vmem>>, %arg2: memref<8x128xf32, #tpu.memory_space<vmem>>, %arg3: memref<1x128xf32, #tpu.memory_space<vmem>>, %arg4: memref<8x128x128xbf16, #tpu.memory_space<vmem>>, %arg5: memref<8x1x128xf32, #tpu.memory_space<vmem>>, %arg6: memref<128x8xf32, #tpu.memory_space<vmem>>, %arg7: memref<1x8xf32, #tpu.memory_space<vmem>>, %arg8: memref<8x8xf32, #tpu.memory_space<vmem>>) attributes {dimension_semantics = [#tpu.dimension_semantics<parallel>], iteration_bounds = array<i64: 2>, scalar_prefetch = 0 : i64, scratch_operands = 0 : i64, tpu.core_type = #tpu.core_type<tc>, window_params = [{transform_indices = @transform_0, window_bounds = array<i64: 8, 8>}, {pipeline_mode = #tpu.pipeline_mode<synchronous>, transform_indices = @transform_1, window_bounds = array<i64: 8, 128>}, {pipeline_mode = #tpu.pipeline_mode<synchronous>, transform_indices = @transform_2, window_bounds = array<i64: 1, 128>}, {pipeline_mode = #tpu.pipeline_mode<synchronous>, transform_indices = @transform_3, window_bounds = array<i64: 8, 128, 128>}, {pipeline_mode = #tpu.pipeline_mode<synchronous>, transform_indices = @transform_4, window_bounds = array<i64: 8, 1, 128>}, {pipeline_mode = #tpu.pipeline_mode<synchronous>, transform_indices = @transform_5, window_bounds = array<i64: 128, 8>}, {pipeline_mode = #tpu.pipeline_mode<synchronous>, transform_indices = @transform_6, window_bounds = array<i64: 1, 8>}, {transform_indices = @transform_7, window_bounds = array<i64: 8, 8>}]} {
    %c0 = arith.constant 0 : index
    %c0_0 = arith.constant 0 : index
    %0 = vector.load %arg1[%c0, %c0_0] : memref<8x8xf32, #tpu.memory_space<vmem>>, vector<8x8xf32>
    %1 = arith.truncf %0 : vector<8x8xf32> to vector<8x8xbf16>
    %c0_1 = arith.constant 0 : index
    %c0_2 = arith.constant 0 : index
    %2 = vector.load %arg2[%c0_1, %c0_2] : memref<8x128xf32, #tpu.memory_space<vmem>>, vector<8x128xf32>
    %3 = arith.truncf %2 : vector<8x128xf32> to vector<8x128xbf16>
    %cst = arith.constant dense<0.000000e+00> : vector<8x128xf32>
    %4 = tpu.matmul %1, %3, %cst {dimension_numbers = #tpu.dot_dimension_numbers<[1], [0], [0], [1], [0, 0, 1, 1], [], []>} : vector<8x8xbf16>, vector<8x128xbf16>, vector<8x128xf32> -> vector<8x128xf32>
    %c0_3 = arith.constant 0 : index
    %c0_4 = arith.constant 0 : index
    %5 = vector.load %arg3[%c0_3, %c0_4] : memref<1x128xf32, #tpu.memory_space<vmem>>, vector<1x128xf32>
    %6 = vector.broadcast %5 : vector<1x128xf32> to vector<8x128xf32>
    %7 = arith.addf %4, %6 : vector<8x128xf32>
    %cst_5 = arith.constant 0.000000e+00 : f32
    %8 = vector.broadcast %cst_5 : f32 to vector<8x128xf32>
    %9 = arith.maximumf %7, %8 : vector<8x128xf32>
    %10 = arith.truncf %9 : vector<8x128xf32> to vector<8x128xbf16>
    %c0_i32 = arith.constant 0 : i32
    %11 = arith.index_cast %c0_i32 : i32 to index
    %c0_6 = arith.constant 0 : index
    %c0_7 = arith.constant 0 : index
    %12 = vector.load %arg4[%11, %c0_6, %c0_7] : memref<8x128x128xbf16, #tpu.memory_space<vmem>>, vector<1x128x128xbf16>
    %13 = vector.shape_cast %12 : vector<1x128x128xbf16> to vector<128x128xbf16>
    %cst_8 = arith.constant dense<0.000000e+00> : vector<8x128xf32>
    %14 = tpu.matmul %10, %13, %cst_8 {dimension_numbers = #tpu.dot_dimension_numbers<[1], [0], [0], [1], [0, 0, 1, 1], [], []>} : vector<8x128xbf16>, vector<128x128xbf16>, vector<8x128xf32> -> vector<8x128xf32>
    %15 = arith.index_cast %c0_i32 : i32 to index
    %c0_9 = arith.constant 0 : index
    %c0_10 = arith.constant 0 : index
    %16 = vector.load %arg5[%15, %c0_9, %c0_10] : memref<8x1x128xf32, #tpu.memory_space<vmem>>, vector<1x1x128xf32>
    %17 = vector.shape_cast %16 : vector<1x1x128xf32> to vector<1x128xf32>
    %18 = vector.broadcast %17 : vector<1x128xf32> to vector<8x128xf32>
    %19 = arith.addf %14, %18 : vector<8x128xf32>
    %cst_11 = arith.constant 0.000000e+00 : f32
    %20 = vector.broadcast %cst_11 : f32 to vector<8x128xf32>
    %21 = arith.maximumf %19, %20 : vector<8x128xf32>
    %22 = arith.truncf %21 : vector<8x128xf32> to vector<8x128xbf16>
    %c1_i32 = arith.constant 1 : i32
    %23 = arith.index_cast %c1_i32 : i32 to index
    %c0_12 = arith.constant 0 : index
    %c0_13 = arith.constant 0 : index
    %24 = vector.load %arg4[%23, %c0_12, %c0_13] : memref<8x128x128xbf16, #tpu.memory_space<vmem>>, vector<1x128x128xbf16>
    %25 = vector.shape_cast %24 : vector<1x128x128xbf16> to vector<128x128xbf16>
    %cst_14 = arith.constant dense<0.000000e+00> : vector<8x128xf32>
    %26 = tpu.matmul %22, %25, %cst_14 {dimension_numbers = #tpu.dot_dimension_numbers<[1], [0], [0], [1], [0, 0, 1, 1], [], []>} : vector<8x128xbf16>, vector<128x128xbf16>, vector<8x128xf32> -> vector<8x128xf32>
    %27 = arith.index_cast %c1_i32 : i32 to index
    %c0_15 = arith.constant 0 : index
    %c0_16 = arith.constant 0 : index
    %28 = vector.load %arg5[%27, %c0_15, %c0_16] : memref<8x1x128xf32, #tpu.memory_space<vmem>>, vector<1x1x128xf32>
    %29 = vector.shape_cast %28 : vector<1x1x128xf32> to vector<1x128xf32>
    %30 = vector.broadcast %29 : vector<1x128xf32> to vector<8x128xf32>
    %31 = arith.addf %26, %30 : vector<8x128xf32>
    %cst_17 = arith.constant 0.000000e+00 : f32
    %32 = vector.broadcast %cst_17 : f32 to vector<8x128xf32>
    %33 = arith.maximumf %31, %32 : vector<8x128xf32>
    %34 = arith.truncf %33 : vector<8x128xf32> to vector<8x128xbf16>
    %c2_i32 = arith.constant 2 : i32
    %35 = arith.index_cast %c2_i32 : i32 to index
    %c0_18 = arith.constant 0 : index
    %c0_19 = arith.constant 0 : index
    %36 = vector.load %arg4[%35, %c0_18, %c0_19] : memref<8x128x128xbf16, #tpu.memory_space<vmem>>, vector<1x128x128xbf16>
    %37 = vector.shape_cast %36 : vector<1x128x128xbf16> to vector<128x128xbf16>
    %cst_20 = arith.constant dense<0.000000e+00> : vector<8x128xf32>
    %38 = tpu.matmul %34, %37, %cst_20 {dimension_numbers = #tpu.dot_dimension_numbers<[1], [0], [0], [1], [0, 0, 1, 1], [], []>} : vector<8x128xbf16>, vector<128x128xbf16>, vector<8x128xf32> -> vector<8x128xf32>
    %39 = arith.index_cast %c2_i32 : i32 to index
    %c0_21 = arith.constant 0 : index
    %c0_22 = arith.constant 0 : index
    %40 = vector.load %arg5[%39, %c0_21, %c0_22] : memref<8x1x128xf32, #tpu.memory_space<vmem>>, vector<1x1x128xf32>
    %41 = vector.shape_cast %40 : vector<1x1x128xf32> to vector<1x128xf32>
    %42 = vector.broadcast %41 : vector<1x128xf32> to vector<8x128xf32>
    %43 = arith.addf %38, %42 : vector<8x128xf32>
    %cst_23 = arith.constant 0.000000e+00 : f32
    %44 = vector.broadcast %cst_23 : f32 to vector<8x128xf32>
    %45 = arith.maximumf %43, %44 : vector<8x128xf32>
    %46 = arith.truncf %45 : vector<8x128xf32> to vector<8x128xbf16>
    %c3_i32 = arith.constant 3 : i32
    %47 = arith.index_cast %c3_i32 : i32 to index
    %c0_24 = arith.constant 0 : index
    %c0_25 = arith.constant 0 : index
    %48 = vector.load %arg4[%47, %c0_24, %c0_25] : memref<8x128x128xbf16, #tpu.memory_space<vmem>>, vector<1x128x128xbf16>
    %49 = vector.shape_cast %48 : vector<1x128x128xbf16> to vector<128x128xbf16>
    %cst_26 = arith.constant dense<0.000000e+00> : vector<8x128xf32>
    %50 = tpu.matmul %46, %49, %cst_26 {dimension_numbers = #tpu.dot_dimension_numbers<[1], [0], [0], [1], [0, 0, 1, 1], [], []>} : vector<8x128xbf16>, vector<128x128xbf16>, vector<8x128xf32> -> vector<8x128xf32>
    %51 = arith.index_cast %c3_i32 : i32 to index
    %c0_27 = arith.constant 0 : index
    %c0_28 = arith.constant 0 : index
    %52 = vector.load %arg5[%51, %c0_27, %c0_28] : memref<8x1x128xf32, #tpu.memory_space<vmem>>, vector<1x1x128xf32>
    %53 = vector.shape_cast %52 : vector<1x1x128xf32> to vector<1x128xf32>
    %54 = vector.broadcast %53 : vector<1x128xf32> to vector<8x128xf32>
    %55 = arith.addf %50, %54 : vector<8x128xf32>
    %cst_29 = arith.constant 0.000000e+00 : f32
    %56 = vector.broadcast %cst_29 : f32 to vector<8x128xf32>
    %57 = arith.maximumf %55, %56 : vector<8x128xf32>
    %58 = arith.truncf %57 : vector<8x128xf32> to vector<8x128xbf16>
    %c4_i32 = arith.constant 4 : i32
    %59 = arith.index_cast %c4_i32 : i32 to index
    %c0_30 = arith.constant 0 : index
    %c0_31 = arith.constant 0 : index
    %60 = vector.load %arg4[%59, %c0_30, %c0_31] : memref<8x128x128xbf16, #tpu.memory_space<vmem>>, vector<1x128x128xbf16>
    %61 = vector.shape_cast %60 : vector<1x128x128xbf16> to vector<128x128xbf16>
    %cst_32 = arith.constant dense<0.000000e+00> : vector<8x128xf32>
    %62 = tpu.matmul %58, %61, %cst_32 {dimension_numbers = #tpu.dot_dimension_numbers<[1], [0], [0], [1], [0, 0, 1, 1], [], []>} : vector<8x128xbf16>, vector<128x128xbf16>, vector<8x128xf32> -> vector<8x128xf32>
    %63 = arith.index_cast %c4_i32 : i32 to index
    %c0_33 = arith.constant 0 : index
    %c0_34 = arith.constant 0 : index
    %64 = vector.load %arg5[%63, %c0_33, %c0_34] : memref<8x1x128xf32, #tpu.memory_space<vmem>>, vector<1x1x128xf32>
    %65 = vector.shape_cast %64 : vector<1x1x128xf32> to vector<1x128xf32>
    %66 = vector.broadcast %65 : vector<1x128xf32> to vector<8x128xf32>
    %67 = arith.addf %62, %66 : vector<8x128xf32>
    %cst_35 = arith.constant 0.000000e+00 : f32
    %68 = vector.broadcast %cst_35 : f32 to vector<8x128xf32>
    %69 = arith.maximumf %67, %68 : vector<8x128xf32>
    %70 = arith.truncf %69 : vector<8x128xf32> to vector<8x128xbf16>
    %c5_i32 = arith.constant 5 : i32
    %71 = arith.index_cast %c5_i32 : i32 to index
    %c0_36 = arith.constant 0 : index
    %c0_37 = arith.constant 0 : index
    %72 = vector.load %arg4[%71, %c0_36, %c0_37] : memref<8x128x128xbf16, #tpu.memory_space<vmem>>, vector<1x128x128xbf16>
    %73 = vector.shape_cast %72 : vector<1x128x128xbf16> to vector<128x128xbf16>
    %cst_38 = arith.constant dense<0.000000e+00> : vector<8x128xf32>
    %74 = tpu.matmul %70, %73, %cst_38 {dimension_numbers = #tpu.dot_dimension_numbers<[1], [0], [0], [1], [0, 0, 1, 1], [], []>} : vector<8x128xbf16>, vector<128x128xbf16>, vector<8x128xf32> -> vector<8x128xf32>
    %75 = arith.index_cast %c5_i32 : i32 to index
    %c0_39 = arith.constant 0 : index
    %c0_40 = arith.constant 0 : index
    %76 = vector.load %arg5[%75, %c0_39, %c0_40] : memref<8x1x128xf32, #tpu.memory_space<vmem>>, vector<1x1x128xf32>
    %77 = vector.shape_cast %76 : vector<1x1x128xf32> to vector<1x128xf32>
    %78 = vector.broadcast %77 : vector<1x128xf32> to vector<8x128xf32>
    %79 = arith.addf %74, %78 : vector<8x128xf32>
    %cst_41 = arith.constant 0.000000e+00 : f32
    %80 = vector.broadcast %cst_41 : f32 to vector<8x128xf32>
    %81 = arith.maximumf %79, %80 : vector<8x128xf32>
    %82 = arith.truncf %81 : vector<8x128xf32> to vector<8x128xbf16>
    %c6_i32 = arith.constant 6 : i32
    %83 = arith.index_cast %c6_i32 : i32 to index
    %c0_42 = arith.constant 0 : index
    %c0_43 = arith.constant 0 : index
    %84 = vector.load %arg4[%83, %c0_42, %c0_43] : memref<8x128x128xbf16, #tpu.memory_space<vmem>>, vector<1x128x128xbf16>
    %85 = vector.shape_cast %84 : vector<1x128x128xbf16> to vector<128x128xbf16>
    %cst_44 = arith.constant dense<0.000000e+00> : vector<8x128xf32>
    %86 = tpu.matmul %82, %85, %cst_44 {dimension_numbers = #tpu.dot_dimension_numbers<[1], [0], [0], [1], [0, 0, 1, 1], [], []>} : vector<8x128xbf16>, vector<128x128xbf16>, vector<8x128xf32> -> vector<8x128xf32>
    %87 = arith.index_cast %c6_i32 : i32 to index
    %c0_45 = arith.constant 0 : index
    %c0_46 = arith.constant 0 : index
    %88 = vector.load %arg5[%87, %c0_45, %c0_46] : memref<8x1x128xf32, #tpu.memory_space<vmem>>, vector<1x1x128xf32>
    %89 = vector.shape_cast %88 : vector<1x1x128xf32> to vector<1x128xf32>
    %90 = vector.broadcast %89 : vector<1x128xf32> to vector<8x128xf32>
    %91 = arith.addf %86, %90 : vector<8x128xf32>
    %cst_47 = arith.constant 0.000000e+00 : f32
    %92 = vector.broadcast %cst_47 : f32 to vector<8x128xf32>
    %93 = arith.maximumf %91, %92 : vector<8x128xf32>
    %94 = arith.truncf %93 : vector<8x128xf32> to vector<8x128xbf16>
    %c7_i32 = arith.constant 7 : i32
    %95 = arith.index_cast %c7_i32 : i32 to index
    %c0_48 = arith.constant 0 : index
    %c0_49 = arith.constant 0 : index
    %96 = vector.load %arg4[%95, %c0_48, %c0_49] : memref<8x128x128xbf16, #tpu.memory_space<vmem>>, vector<1x128x128xbf16>
    %97 = vector.shape_cast %96 : vector<1x128x128xbf16> to vector<128x128xbf16>
    %cst_50 = arith.constant dense<0.000000e+00> : vector<8x128xf32>
    %98 = tpu.matmul %94, %97, %cst_50 {dimension_numbers = #tpu.dot_dimension_numbers<[1], [0], [0], [1], [0, 0, 1, 1], [], []>} : vector<8x128xbf16>, vector<128x128xbf16>, vector<8x128xf32> -> vector<8x128xf32>
    %99 = arith.index_cast %c7_i32 : i32 to index
    %c0_51 = arith.constant 0 : index
    %c0_52 = arith.constant 0 : index
    %100 = vector.load %arg5[%99, %c0_51, %c0_52] : memref<8x1x128xf32, #tpu.memory_space<vmem>>, vector<1x1x128xf32>
    %101 = vector.shape_cast %100 : vector<1x1x128xf32> to vector<1x128xf32>
    %102 = vector.broadcast %101 : vector<1x128xf32> to vector<8x128xf32>
    %103 = arith.addf %98, %102 : vector<8x128xf32>
    %cst_53 = arith.constant 0.000000e+00 : f32
    %104 = vector.broadcast %cst_53 : f32 to vector<8x128xf32>
    %105 = arith.maximumf %103, %104 : vector<8x128xf32>
    %106 = arith.truncf %105 : vector<8x128xf32> to vector<8x128xbf16>
    %c8_i32 = arith.constant 8 : i32
    %c0_54 = arith.constant 0 : index
    %c0_55 = arith.constant 0 : index
    %107 = vector.load %arg6[%c0_54, %c0_55] : memref<128x8xf32, #tpu.memory_space<vmem>>, vector<128x8xf32>
    %108 = arith.truncf %107 : vector<128x8xf32> to vector<128x8xbf16>
    %cst_56 = arith.constant dense<0.000000e+00> : vector<8x8xf32>
    %109 = tpu.matmul %106, %108, %cst_56 {dimension_numbers = #tpu.dot_dimension_numbers<[1], [0], [0], [1], [0, 0, 1, 1], [], []>} : vector<8x128xbf16>, vector<128x8xbf16>, vector<8x8xf32> -> vector<8x8xf32>
    %c0_57 = arith.constant 0 : index
    %c0_58 = arith.constant 0 : index
    %110 = vector.load %arg7[%c0_57, %c0_58] : memref<1x8xf32, #tpu.memory_space<vmem>>, vector<1x8xf32>
    %111 = vector.broadcast %110 : vector<1x8xf32> to vector<8x8xf32>
    %112 = arith.addf %109, %111 : vector<8x8xf32>
    %c0_59 = arith.constant 0 : index
    %c0_60 = arith.constant 0 : index
    %113 = vector.load %arg8[%c0_59, %c0_60] : memref<8x8xf32, #tpu.memory_space<vmem>>, vector<8x8xf32>
    tpu.vector_store %arg8[%c0_59, %c0_60], %112 {strides = array<i32>} : memref<8x8xf32, #tpu.memory_space<vmem>>, vector<8x8xf32>,
    return
  }
  func.func @transform_0(%arg0: i32) -> (i32, i32) {
    %c0_i32 = arith.constant 0 : i32
    %c0_i32_0 = arith.constant 0 : i32
    return %arg0, %c0_i32 : i32, i32
  }
  func.func @transform_1(%arg0: i32) -> (i32, i32) {
    %c0_i32 = arith.constant 0 : i32
    %c0_i32_0 = arith.constant 0 : i32
    %c0_i32_1 = arith.constant 0 : i32
    return %c0_i32, %c0_i32_0 : i32, i32
  }
  func.func @transform_2(%arg0: i32) -> (i32, i32) {
    %c0_i32 = arith.constant 0 : i32
    %c0_i32_0 = arith.constant 0 : i32
    %c0_i32_1 = arith.constant 0 : i32
    return %c0_i32, %c0_i32_0 : i32, i32
  }
  func.func @transform_3(%arg0: i32) -> (i32, i32, i32) {
    %c0_i32 = arith.constant 0 : i32
    %c0_i32_0 = arith.constant 0 : i32
    %c0_i32_1 = arith.constant 0 : i32
    %c0_i32_2 = arith.constant 0 : i32
    return %c0_i32, %c0_i32_0, %c0_i32_1 : i32, i32, i32
  }
  func.func @transform_4(%arg0: i32) -> (i32, i32, i32) {
    %c0_i32 = arith.constant 0 : i32
    %c0_i32_0 = arith.constant 0 : i32
    %c0_i32_1 = arith.constant 0 : i32
    %c0_i32_2 = arith.constant 0 : i32
    return %c0_i32, %c0_i32_0, %c0_i32_1 : i32, i32, i32
  }
  func.func @transform_5(%arg0: i32) -> (i32, i32) {
    %c0_i32 = arith.constant 0 : i32
    %c0_i32_0 = arith.constant 0 : i32
    %c0_i32_1 = arith.constant 0 : i32
    return %c0_i32, %c0_i32_0 : i32, i32
  }
  func.func @transform_6(%arg0: i32) -> (i32, i32) {
    %c0_i32 = arith.constant 0 : i32
    %c0_i32_0 = arith.constant 0 : i32
    %c0_i32_1 = arith.constant 0 : i32
    return %c0_i32, %c0_i32_0 : i32, i32
  }
  func.func @transform_7(%arg0: i32) -> (i32, i32) {
    %c0_i32 = arith.constant 0 : i32
    %c0_i32_0 = arith.constant 0 : i32
    return %arg0, %c0_i32 : i32, i32
  }
}

</mosaic_0001>

<bundles_post_ra>
// kernel: tpu_custom_call.1
= control target key start
LH: loop header
LB: loop body
LE: loop exit
PB: predicated region body
PF: predicated region fallthrough
CT: control target
= control target key end

     0   :  { %12 = vsyncpa [#allocation3], 0  ;;  %s1563_s24 = smov 0   ;;  %s1673_s0 = inlined_call_operand.vmem [shape: f32[16,8], index: 0, kind: input, shape index: {}]   ;;  %s1674_s1 = inlined_call_operand.vmem [shape: f32[8,128], index: 1, kind: input, shape index: {}]   ;;  %s1675_s2 = inlined_call_operand.vmem [shape: f32[1,128], index: 2, kind: input, shape index: {}]   ;;  %s1676_s3 = inlined_call_operand.hbm [shape: bf16[8,128,128], index: 3, kind: input, shape index: {}]   ;;  %s1677_s4 = inlined_call_operand.vmem [shape: f32[8,1,128], index: 4, kind: input, shape index: {}]   ;;  %s1678_s5 = inlined_call_operand.vmem [shape: f32[128,8], index: 5, kind: input, shape index: {}]   ;;  %s1679_s6 = inlined_call_operand.vmem [shape: f32[1,8], index: 6, kind: input, shape index: {}]   ;;  %s1680_s7 = inlined_call_operand.vmem [shape: f32[16,8], index: 7, kind: output, shape index: {}]  }
   0x1 LB: > { %s218_s27 = sshll.u32 %s1676_s3, 4  ;;  %s1108_s28 = sadd.s32 4294967295, %s1518_s24   ;;  %s1518_s24 = sphi %s1563_s24, %s18_s24   ;;  %s219_s27 = int_to_ptr.hbm [resolvable:$true] %s218_s27 }
   0x2   : > { %p1110_p0 = scmp.ge.s32.totalorder %s1518_s24, 1  ;;  %p201_p1 = scmp.lt.s32.totalorder %s1518_s24, 3 }
   0x3   : > { %p1455_p2 = scmp.eq.s32.totalorder %s1108_s28, 0  ;;  %s1520_s29 = smov [#allocation2]  }
   0x4   : > { %p202_p3 = pnand %p1110_p0, %p201_p1  ;;  %s220_s30 = sshll.u32 %s1520_s29, 4  ;;  %s221_s30 = int_to_ptr.vmem [resolvable:$true] %s220_s30 }
   0x5   : > { %s1521_s8 = smov 64   ;;  %s1522_s9 = smov 4  }
   0x6   : > { %p1451_p4 = pneg %p202_p3  ;;  %252 = sbr.rel (%p202_p3) target bundleno = 1366 (0x556), region = 48 }
   0x8   : > { %p1452_p5 = pnand %p1455_p2, %p1451_p4 }
   0xa   : > { %1454 = dma.hbm_to_vmem [thread:$0]  (!%p1452_p5), %s219_s27, 8192, %s221_s30, [#allocation3], %s1521_s8, %s1521_s8, %s1522_s9  }
   0xb   : > { %1513 = dma.done.wait (%p1455_p2), [#allocation3], 8192  }
   0xc   : > { %1515 = vsyncadd (%p1455_p2), [#allocation3], 4294959104  ;;  %p283_p6 = scmp.lt.s32.totalorder %s1108_s28, 1  ;;  %v294_v0 = vld [vmem:[%s1674_s1] sm:$0xff]  ;;  %vm304_vm0 = vcmask 1043456   ;;  %v1390_v2 = vld [vmem:[#allocation2 + $0x38] sm:$0xff] }
   0xd   : > { %v295_v3 = vpack.c.bf16 %v294_v0, %v294_v0  ;;  %391 = vmatpush.bf16.msra.mxu1 %v1390_v2  ;;  %v1389_v4 = vld [vmem:[#allocation2 + $0x30] sm:$0xff]  ;;  %vm300_vm1 = vcmask 64512   ;;  %v1388_v7 = vld [vmem:[#allocation2 + $0x28] sm:$0xff]  ;;  %v1387_v8 = vld [vmem:[#allocation2 + $0x20] sm:$0xff] }
   0xe   : > { %s1682_s28 = smov (!%p283_p6, %s1108_s28), 1  ;;  %v1386_v9 = vld [vmem:[#allocation2 + $0x18] sm:$0xff]  ;;  %v1385_v10 = vld [vmem:[#allocation2 + $0x10] sm:$0xff]  ;;  %v1384_v11 = vld [vmem:[#allocation2 + $0x8] sm:$0xff] }
   0xf   : > { %s1115_s10 = sshll.u32 %s1682_s28, 3  ;;  %v306_v5 = vsel %vm304_vm0, %v295_v3, 0  ;;  %v1383_v12 = vld [vmem:[#allocation2] sm:$0xff]  ;;  %v1398_v13 = vld [vmem:[#allocation2 + $0x78] sm:$0xff]  ;;  %v1397_v14 = vld [vmem:[#allocation2 + $0x70] sm:$0xff] }
  0x10   : > { %s286_s13 = scalar_lea.vmem %s1673_s0, %s1115_s10  ;;  %315 = vmatpush.bf16.msra.mxu0 %v306_v5  ;;  %476 = vmatpush.bf16.msra.mxu2 %v1398_v13  ;;  %v1396_v15 = vld [vmem:[#allocation2 + $0x68] sm:$0xff]  ;;  %v1395_v16 = vld [vmem:[#allocation2 + $0x60] sm:$0xff]  ;;  %v1394_v17 = vld [vmem:[#allocation2 + $0x58] sm:$0xff]  ;;  %s290_s9 = scalar_lea.vmem %s1680_s7, %s1115_s10 }
  0x11   : > { %v292_v1 = vld [vmem:[%s286_s13] sm:$0xff]  ;;  %392 = vmatpush.bf16.msra.mxu1 %v1389_v4  ;;  %v1393_v18 = vld [vmem:[#allocation2 + $0x50] sm:$0xff]  ;;  %v1392_v25 = vld [vmem:[#allocation2 + $0x48] sm:$0xff] }
  0x12   : > { %v293_v6 = vpack.c.bf16 %v292_v1, %v292_v1  ;;  %v1468_v19 = vld [vmem:[%s1675_s2] ss:$0 sm:$0xff]  ;;  %v1406_v27 = vld [vmem:[#allocation2 + $0xb8] sm:$0xff]  ;;  %v1405_v28 = vld [vmem:[#allocation2 + $0xb0] sm:$0xff] }
  0x13   : > { %v1391_v26 = vld [vmem:[#allocation2 + $0x40] sm:$0xff]  ;;  %561 = vmatpush.bf16.msra.mxu3 %v1406_v27  ;;  %v1404_v29 = vld [vmem:[#allocation2 + $0xa8] sm:$0xff]  ;;  %v1402_v31 = vld [vmem:[#allocation2 + $0x98] sm:$0xff] }
  0x14   : > { %1117 = vmatmul.msk.bf16.vlgmr.msra.gmra.mxu0 %vm300_vm1, %v293_v6  ;;  %477 = vmatpush.bf16.msra.mxu2 %v1397_v14  ;;  %v1403_v30 = vld [vmem:[#allocation2 + $0xa0] sm:$0xff]  ;;  %v1401_v32 = vld [vmem:[#allocation2 + $0x90] sm:$0xff]  ;;  %v1400_v39 = vld [vmem:[#allocation2 + $0x88] sm:$0xff] }
  0x15   : > { %393 = vmatpush.bf16.msra.mxu1 %v1388_v7  ;;  %v1469_v33 = vld [vmem:[%s1677_s4] ss:$0 sm:$0xff]  ;;  %v1414_v41 = vld [vmem:[#allocation2 + $0xf8] sm:$0xff]  ;;  %v1413_v42 = vld [vmem:[#allocation2 + $0xf0] sm:$0xff] }
  0x16   : > { %v1399_v40 = vld [vmem:[#allocation2 + $0x80] sm:$0xff]  ;;  %646 = vmatpush.bf16.msrb.mxu0 %v1414_v41  ;;  %v1412_v43 = vld [vmem:[#allocation2 + $0xe8] sm:$0xff]  ;;  %v1410_v45 = vld [vmem:[#allocation2 + $0xd8] sm:$0xff] }
  0x17   : > { %562 = vmatpush.bf16.msra.mxu3 %v1405_v28  ;;  %v1411_v44 = vld [vmem:[#allocation2 + $0xe0] sm:$0xff]  ;;  %v1409_v46 = vld [vmem:[#allocation2 + $0xd0] sm:$0xff]  ;;  %v1408_v53 = vld [vmem:[#allocation2 + $0xc8] sm:$0xff] }
  0x18   : > { %478 = vmatpush.bf16.msra.mxu2 %v1396_v15  ;;  %v1470_v47 = vld [vmem:[%s1677_s4 + $0x1] ss:$0 sm:$0xff]  ;;  %v1422_v55 = vld [vmem:[#allocation2 + $0x138] sm:$0xff]  ;;  %v1421_v56 = vld [vmem:[#allocation2 + $0x130] sm:$0xff] }
  0x19   : > { %394 = vmatpush.bf16.msra.mxu1 %v1387_v8  ;;  %v1407_v54 = vld [vmem:[#allocation2 + $0xc0] sm:$0xff]  ;;  %v1420_v57 = vld [vmem:[#allocation2 + $0x128] sm:$0xff]  ;;  %v1418_v59 = vld [vmem:[#allocation2 + $0x118] sm:$0xff] }
  0x1a   : > { %647 = vmatpush.bf16.msrb.mxu0 %v1413_v42  ;;  %v1419_v58 = vld [vmem:[#allocation2 + $0x120] sm:$0xff]  ;;  %v1417_v60 = vld [vmem:[#allocation2 + $0x110] sm:$0xff]  ;;  %v1416_v3 = vld [vmem:[#allocation2 + $0x108] sm:$0xff] }
  0x1b   : > { %563 = vmatpush.bf16.msra.mxu3 %v1404_v29  ;;  %v1471_v61 = vld [vmem:[%s1677_s4 + $0x2] ss:$0 sm:$0xff]  ;;  %v1430_v5 = vld [vmem:[#allocation2 + $0x178] sm:$0xff]  ;;  %v1429_v6 = vld [vmem:[#allocation2 + $0x170] sm:$0xff] }
  0x1c   : > { %479 = vmatpush.bf16.msra.mxu2 %v1395_v16  ;;  %v1415_v4 = vld [vmem:[#allocation2 + $0x100] sm:$0xff]  ;;  %v1428_v7 = vld [vmem:[#allocation2 + $0x168] sm:$0xff] }
  0x1d   : > { %395 = vmatpush.bf16.msra.mxu1 %v1386_v9  ;;  %v1427_v8 = vld [vmem:[#allocation2 + $0x160] sm:$0xff]  ;;  %v1426_v9 = vld [vmem:[#allocation2 + $0x158] sm:$0xff] }
  0x1e   : > { %648 = vmatpush.bf16.msrb.mxu0 %v1412_v43 }
  0x1f   : > { %564 = vmatpush.bf16.msra.mxu3 %v1403_v30 }
  0x20   : > { %480 = vmatpush.bf16.msra.mxu2 %v1394_v17  ;;  %v1424_v17 = vld [vmem:[#allocation2 + $0x148] sm:$0xff] }
  0x21   : > { %396 = vmatpush.bf16.msra.mxu1 %v1385_v10  ;;  %v1425_v10 = vld [vmem:[#allocation2 + $0x150] sm:$0xff] }
  0x22   : > { %649 = vmatpush.bf16.msrb.mxu0 %v1411_v44 }
  0x23   : > { %565 = vmatpush.bf16.msra.mxu3 %v1402_v31  ;;  %v1432_v31 = vld [vmem:[#allocation2 + $0x188] sm:$0xff] }
  0x24   : > { %481 = vmatpush.bf16.msra.mxu2 %v1393_v18  ;;  %v1423_v18 = vld [vmem:[#allocation2 + $0x140] sm:$0xff] }
  0x25   : > { %397 = vmatpush.bf16.msra.mxu1 %v1384_v11  ;;  %v1472_v11 = vld [vmem:[%s1677_s4 + $0x3] ss:$0 sm:$0xff] }
  0x26   : > { %650 = vmatpush.bf16.msrb.mxu0 %v1410_v45  ;;  %v1440_v45 = vld [vmem:[#allocation2 + $0x1c8] sm:$0xff] }
  0x27   : > { %566 = vmatpush.bf16.msra.mxu3 %v1401_v32  ;;  %v1431_v32 = vld [vmem:[#allocation2 + $0x180] sm:$0xff] }
  0x28   : > { %482 = vmatpush.bf16.msra.mxu2 %v1392_v25  ;;  %v1473_v25 = vld [vmem:[%s1677_s4 + $0x4] ss:$0 sm:$0xff] }
  0x29   : > { %398 = vmatpush.bf16.msra.mxu1 %v1383_v12 }
  0x2a   : > { %651 = vmatpush.bf16.msrb.mxu0 %v1409_v46  ;;  %v1439_v46 = vld [vmem:[#allocation2 + $0x1c0] sm:$0xff] }
  0x2b   : > { %567 = vmatpush.bf16.msra.mxu3 %v1400_v39  ;;  %v1474_v39 = vld [vmem:[%s1677_s4 + $0x5] ss:$0 sm:$0xff] }
  0x2c   : > { %483 = vmatpush.bf16.msra.mxu2 %v1391_v26 }
  0x2d   : > { %731 = vmatpush.bf16.msrb.mxu1 %v1422_v55 }
  0x2e   : > { %652 = vmatpush.bf16.msrb.mxu0 %v1408_v53  ;;  %v1011_v53 = vld [vmem:[%s1678_s5 + $0x50] sm:$0xff] }
  0x2f   : > { %568 = vmatpush.bf16.msra.mxu3 %v1399_v40 }
  0x30   : > { %816 = vmatpush.bf16.msrb.mxu2 %v1430_v5 }
  0x31   : > { %732 = vmatpush.bf16.msrb.mxu1 %v1421_v56  ;;  %v1009_v56 = vld [vmem:[%s1678_s5 + $0x40] sm:$0xff] }
  0x32   : > { %653 = vmatpush.bf16.msrb.mxu0 %v1407_v54  ;;  %v1012_v54 = vld [vmem:[%s1678_s5 + $0x58] sm:$0xff] }
  0x33   : > { %v1022_v55 = vpack.c.bf16 %v1012_v54, %v1011_v53 }
  0x34   : > { %817 = vmatpush.bf16.msrb.mxu2 %v1429_v6 }
  0x35   : > { %733 = vmatpush.bf16.msrb.mxu1 %v1420_v57  ;;  %v1010_v57 = vld [vmem:[%s1678_s5 + $0x48] sm:$0xff] }
  0x38   : > { %818 = vmatpush.bf16.msrb.mxu2 %v1428_v7  ;;  %v1003_v7 = vld [vmem:[%s1678_s5 + $0x10] sm:$0xff] }
  0x39   : > { %734 = vmatpush.bf16.msrb.mxu1 %v1419_v58  ;;  %v1021_v58 = vpack.c.bf16 %v1010_v57, %v1009_v56 }
  0x3c   : > { %819 = vmatpush.bf16.msrb.mxu2 %v1427_v8  ;;  %v1004_v8 = vld [vmem:[%s1678_s5 + $0x18] sm:$0xff] }
  0x3d   : > { %735 = vmatpush.bf16.msrb.mxu1 %v1418_v59  ;;  %v1007_v59 = vld [vmem:[%s1678_s5 + $0x30] sm:$0xff] }
  0x40   : > { %820 = vmatpush.bf16.msrb.mxu2 %v1426_v9  ;;  %v1018_v9 = vpack.c.bf16 %v1004_v8, %v1003_v7 }
  0x41   : > { %736 = vmatpush.bf16.msrb.mxu1 %v1417_v60  ;;  %v1008_v60 = vld [vmem:[%s1678_s5 + $0x38] sm:$0xff] }
  0x44   : > { %821 = vmatpush.bf16.msrb.mxu2 %v1425_v10  ;;  %v1001_v10 = vld [vmem:[%s1678_s5] sm:$0xff] }
  0x45   : > { %737 = vmatpush.bf16.msrb.mxu1 %v1416_v3 }
  0x48   : > { %822 = vmatpush.bf16.msrb.mxu2 %v1424_v17 }
  0x49   : > { %738 = vmatpush.bf16.msrb.mxu1 %v1415_v4 }
  0x4c   : > { %823 = vmatpush.bf16.msrb.mxu2 %v1423_v18 }
  0x91   : > { %v317_v20 = vpop.f32.mrf.mxu0 }
  0x92   : > { %v318_v21 = vadd.f32 %v1468_v19, %v317_v20  ;;  %v1438_v19 = vld [vmem:[#allocation2 + $0x1b8] sm:$0xff]  ;;  %v1437_v20 = vld [vmem:[#allocation2 + $0x1b0] sm:$0xff] }
  0x93   : > { %901 = vmatpush.bf16.msrb.mxu3 %v1438_v19  ;;  %v1477_v19 = vld [vmem:[%s1679_s6] ss:$0 sm:$0xff] }
  0x94   : > { %v321_v22 = vmax.f32 %v318_v21, 0.0  ;;  %v1436_v21 = vld [vmem:[#allocation2 + $0x1a8] sm:$0xff] }
  0x96   : > { %v322_v23 = vpack.c.bf16 %v321_v22, %v321_v22  ;;  %v1435_v22 = vld [vmem:[#allocation2 + $0x1a0] sm:$0xff] }
  0x97   : > { %902 = vmatpush.bf16.msrb.mxu3 %v1437_v20 }
  0x98   : > { %399 = vmatmul.bf16.vlgmr.msra.gmra.mxu1 %v322_v23  ;;  %v1434_v23 = vld [vmem:[#allocation2 + $0x198] sm:$0xff] }
  0x99   : > { %v319_v24 = vpop.f32.mrf.mxu0 }
  0x9a   : > { %v1433_v24 = vld [vmem:[#allocation2 + $0x190] sm:$0xff] }
  0x9b   : > { %903 = vmatpush.bf16.msrb.mxu3 %v1436_v21 }
  0x9f   : > { %904 = vmatpush.bf16.msrb.mxu3 %v1435_v22 }
  0xa3   : > { %905 = vmatpush.bf16.msrb.mxu3 %v1434_v23 }
  0xa7   : > { %906 = vmatpush.bf16.msrb.mxu3 %v1433_v24 }
  0xab   : > { %907 = vmatpush.bf16.msrb.mxu3 %v1432_v31 }
  0xaf   : > { %908 = vmatpush.bf16.msrb.mxu3 %v1431_v32 }
 0x115   : > { %v400_v34 = vpop.f32.mrf.mxu1 }
 0x116   : > { %v401_v35 = vadd.f32 %v1469_v33, %v400_v34  ;;  %v1446_v33 = vld [vmem:[#allocation2 + $0x1f8] sm:$0xff]  ;;  %v1445_v34 = vld [vmem:[#allocation2 + $0x1f0] sm:$0xff] }
 0x117   : > { %986 = vmatpush.bf16.msra.mxu0 %v1446_v33 }
 0x118   : > { %v404_v36 = vmax.f32 %v401_v35, 0.0  ;;  %v1444_v35 = vld [vmem:[#allocation2 + $0x1e8] sm:$0xff] }
 0x11a   : > { %v405_v37 = vpack.c.bf16 %v404_v36, %v404_v36  ;;  %v1443_v36 = vld [vmem:[#allocation2 + $0x1e0] sm:$0xff] }
 0x11b   : > { %987 = vmatpush.bf16.msra.mxu0 %v1445_v34 }
 0x11c   : > { %484 = vmatmul.bf16.vlgmr.msra.gmra.mxu2 %v405_v37  ;;  %v1442_v37 = vld [vmem:[#allocation2 + $0x1d8] sm:$0xff] }
 0x11d   : > { %v402_v38 = vpop.f32.mrf.mxu1 }
 0x11e   : > { %v1441_v38 = vld [vmem:[#allocation2 + $0x1d0] sm:$0xff] }
 0x11f   : > { %988 = vmatpush.bf16.msra.mxu0 %v1444_v35 }
 0x123   : > { %989 = vmatpush.bf16.msra.mxu0 %v1443_v36 }
 0x127   : > { %990 = vmatpush.bf16.msra.mxu0 %v1442_v37 }
 0x12b   : > { %991 = vmatpush.bf16.msra.mxu0 %v1441_v38 }
 0x12f   : > { %992 = vmatpush.bf16.msra.mxu0 %v1440_v45 }
 0x133   : > { %993 = vmatpush.bf16.msra.mxu0 %v1439_v46 }
 0x19f   : > { %v485_v48 = vpop.f32.mrf.mxu2 }
 0x1a0   : > { %v486_v49 = vadd.f32 %v1470_v47, %v485_v48  ;;  %v1015_v47 = vld [vmem:[%s1678_s5 + $0x70] sm:$0xff]  ;;  %v1016_v48 = vld [vmem:[%s1678_s5 + $0x78] sm:$0xff] }
 0x1a2   : > { %v489_v50 = vmax.f32 %v486_v49, 0.0  ;;  %v1013_v49 = vld [vmem:[%s1678_s5 + $0x60] sm:$0xff] }
 0x1a4   : > { %v490_v51 = vpack.c.bf16 %v489_v50, %v489_v50  ;;  %v1024_v50 = vpack.c.bf16 %v1016_v48, %v1015_v47 }
 0x1a6   : > { %569 = vmatmul.bf16.vlgmr.msra.gmra.mxu3 %v490_v51  ;;  %v1014_v51 = vld [vmem:[%s1678_s5 + $0x68] sm:$0xff]  ;;  %1029 = vmatpush.bf16.msra.mxu1 %v1024_v50 }
 0x1a7   : > { %v487_v52 = vpop.f32.mrf.mxu2 }
 0x1a8   : > { %v1023_v52 = vpack.c.bf16 %v1014_v51, %v1013_v49 }
 0x1aa   : > { %1030 = vmatpush.bf16.msra.mxu1 %v1023_v52 }
 0x1ae   : > { %1031 = vmatpush.bf16.msra.mxu1 %v1022_v55 }
 0x1b2   : > { %1032 = vmatpush.bf16.msra.mxu1 %v1021_v58 }
 0x229   : > { %v570_v62 = vpop.f32.mrf.mxu3 }
 0x22a   : > { %v571_v63 = vadd.f32 %v1471_v61, %v570_v62  ;;  %v1020_v61 = vpack.c.bf16 %v1008_v60, %v1007_v59  ;;  %v1005_v62 = vld [vmem:[%s1678_s5 + $0x20] sm:$0xff] }
 0x22c   : > { %v574_v0 = vmax.f32 %v571_v63, 0.0  ;;  %v1006_v63 = vld [vmem:[%s1678_s5 + $0x28] sm:$0xff]  ;;  %1033 = vmatpush.bf16.msra.mxu1 %v1020_v61 }
 0x22e   : > { %v575_v1 = vpack.c.bf16 %v574_v0, %v574_v0  ;;  %v1019_v0 = vpack.c.bf16 %v1006_v63, %v1005_v62 }
 0x230   : > { %654 = vmatmul.bf16.vlgmr.msrb.gmra.mxu0 %v575_v1  ;;  %v1475_v1 = vld [vmem:[%s1677_s4 + $0x6] ss:$0 sm:$0xff]  ;;  %1034 = vmatpush.bf16.msra.mxu1 %v1019_v0 }
 0x231   : > { %v572_v2 = vpop.f32.mrf.mxu3 }
 0x234   : > { %1035 = vmatpush.bf16.msra.mxu1 %v1018_v9 }
 0x2ad   : > { %v655_v12 = vpop.f32.mrf.mxu0 }
 0x2ae   : > { %v656_v13 = vadd.f32 %v1472_v11, %v655_v12  ;;  %v1002_v11 = vld [vmem:[%s1678_s5 + $0x8] sm:$0xff] }
 0x2af   : > { %v1017_v12 = vpack.c.bf16 %v1002_v11, %v1001_v10 }
 0x2b0   : > { %v659_v14 = vmax.f32 %v656_v13, 0.0  ;;  %v1476_v13 = vld [vmem:[%s1677_s4 + $0x7] ss:$0 sm:$0xff] }
 0x2b1   : > { %1036 = vmatpush.bf16.msra.mxu1 %v1017_v12 }
 0x2b2   : > { %v660_v15 = vpack.c.bf16 %v659_v14, %v659_v14 }
 0x2b4   : > { %739 = vmatmul.bf16.vlgmr.msrb.gmra.mxu1 %v660_v15 }
 0x2b5   : > { %v657_v16 = vpop.f32.mrf.mxu0 }
 0x331   : > { %v740_v26 = vpop.f32.mrf.mxu1 }
 0x332   : > { %v741_v27 = vadd.f32 %v1473_v25, %v740_v26 }
 0x334   : > { %v744_v28 = vmax.f32 %v741_v27, 0.0 }
 0x336   : > { %v745_v29 = vpack.c.bf16 %v744_v28, %v744_v28 }
 0x338   : > { %824 = vmatmul.bf16.vlgmr.msrb.gmra.mxu2 %v745_v29 }
 0x339   : > { %v742_v30 = vpop.f32.mrf.mxu1 }
 0x3bb   : > { %v825_v40 = vpop.f32.mrf.mxu2 }
 0x3bc   : > { %v826_v41 = vadd.f32 %v1474_v39, %v825_v40 }
 0x3be   : > { %v829_v42 = vmax.f32 %v826_v41, 0.0 }
 0x3c0   : > { %v830_v43 = vpack.c.bf16 %v829_v42, %v829_v42 }
 0x3c2   : > { %909 = vmatmul.bf16.vlgmr.msrb.gmra.mxu3 %v830_v43 }
 0x3c3   : > { %v827_v44 = vpop.f32.mrf.mxu2 }
 0x445   : > { %v910_v2 = vpop.f32.mrf.mxu3 }
 0x446   : > { %v911_v3 = vadd.f32 %v1475_v1, %v910_v2 }
 0x448   : > { %v914_v4 = vmax.f32 %v911_v3, 0.0 }
 0x44a   : > { %v915_v5 = vpack.c.bf16 %v914_v4, %v914_v4 }
 0x44c   : > { %994 = vmatmul.bf16.vlgmr.msra.gmra.mxu0 %v915_v5 }
 0x44d   : > { %v912_v6 = vpop.f32.mrf.mxu3 }
 0x4c9   : > { %v995_v14 = vpop.f32.mrf.mxu0 }
 0x4ca   : > { %v996_v15 = vadd.f32 %v1476_v13, %v995_v14 }
 0x4cc   : > { %v999_v16 = vmax.f32 %v996_v15, 0.0 }
 0x4ce   : > { %v1000_v17 = vpack.c.bf16 %v999_v16, %v999_v16 }
 0x4d0   : > { %1037 = vmatmul.bf16.vlgmr.msra.gmra.mxu1 %v1000_v17 }
 0x4d1   : > { %v997_v18 = vpop.f32.mrf.mxu0 }
 0x54d   : > { %v1038_v20 = vpop.f32.mrf.mxu1 }
 0x54e   : > { %v1039_v21 = vadd.f32 %v1477_v19, %v1038_v20 }
 0x550   : > { %1042 = vst.msk [vmem:[%s290_s9] sm:$0xff] %vm300_vm1, %v1039_v21 }
 0x555   : > { %v1040_v22 = vpop.f32.mrf.mxu1 }
 0x556 PF: > { %s18_s24 = sadd.s32 1, %s1518_s24  }
 0x557   : > { %p15_p7 = scmp.ge.s32.totalorder %s18_s24, 4  }
 0x559   :  { %17 = sbr.rel (!%p15_p7) target bundleno = 1 (0x1), region = 97 }
 0x55e   :  { %1062 = vsyncpa [#allocation3], 1 }
 0x55f   :  { %1064 = vsyncpa [#allocation3 + $0x1], 1 }

</bundles_post_ra>
